<compile_context>
chip_gen: v7x
topology: tpu7x:2x2x1
jax: 0.10.0
libtpu: 0.0.40
codegen_flags: <defaults>
</compile_context>

<pallas_src>
import functools

import jax
import jax.numpy as jnp
from jax import lax
from jax.experimental import pallas as pl
from jax.experimental.pallas import tpu as pltpu


def _round_up(v, m):
    return ((v + m - 1) // m) * m


def _gelu_exact(x):
    # PyTorch F.gelu default (approximate='none'): 0.5*x*(1+erf(x/sqrt(2)))
    return 0.5 * x * (1.0 + lax.erf(x * 0.7071067811865476))


def _tpu_vmem_and_stream_tm():
    """(physical VMEM bytes per TensorCore, streaming-regime row-tile target)."""
    kind = ""
    try:
        kind = jax.devices()[0].device_kind.lower()
    except Exception:
        pass
    vmem = None
    try:
        vmem = int(pltpu.get_tpu_info().vmem_capacity_bytes)
    except Exception:
        vmem = None
    if not vmem or vmem <= 0:
        vmem = (64 if "v7" in kind else 128) * 1024 * 1024
    # Streaming arithmetic intensity == tm flop/byte; place tm above each chip's
    # MXU/HBM roofline knee (~240 v5e, ~640 v6e, ~310 v7x).
    tm_stream = 1024 if "v6" in kind else 512
    return vmem, tm_stream


def ff_kernel(x_ref, w1_ref, b1_ref, w2_ref, b2_ref, g_ref, beta_ref, o_ref,
              acc_ref, xbf_ref, *, eps, inv_c, valid_c, resident):
    """Grid = (row_tiles, hidden_chunks); axis 1 is the reduction over 2C."""
    k = pl.program_id(1)
    nk = pl.num_programs(1)

    # Hoisted x -> bf16 cast: done once per row tile, reused for every hidden chunk.
    @pl.when(k == 0)
    def _():
        xbf_ref[...] = x_ref[...].astype(jnp.bfloat16)

    if resident:
        # Whole weight set is VMEM-resident (fetched once); select chunk k on the
        # leading (untiled) axis.
        w1_blk = w1_ref[k]          # (Cp, tk)
        b1_blk = b1_ref[k]          # (1, tk)
        w2_blk = w2_ref[k]          # (tk, Cp)
    else:
        w1_blk = w1_ref[...]
        b1_blk = b1_ref[...]
        w2_blk = w2_ref[...]

    # linear1 chunk + GELU, then partial linear2 — bf16 operands, f32 MXU accumulation.
    h = jnp.dot(xbf_ref[...], w1_blk, preferred_element_type=jnp.float32)
    h = _gelu_exact(h + b1_blk)
    p = jnp.dot(h.astype(jnp.bfloat16), w2_blk, preferred_element_type=jnp.float32)

    @pl.when(k == 0)
    def _():
        # Seed the accumulator with residual + output bias (dropout is identity at
        # inference) -> no zero-init read-modify-write, no epilogue adds.
        # TODO(synk): training-mode dropout (pltpu.prng_*) not implemented.
        acc_ref[...] = x_ref[...].astype(jnp.float32) + b2_ref[...] + p

    @pl.when(k > 0)
    def _():
        acc_ref[...] += p

    @pl.when(k == nk - 1)
    def _():
        # LayerNorm over the true channel count (padded lanes masked out of the stats).
        y = acc_ref[...]
        mean = jnp.sum(y, axis=-1, keepdims=True) * inv_c
        yc = y - mean
        if valid_c != y.shape[-1]:
            lane = lax.broadcasted_iota(jnp.int32, y.shape, 1)
            yc = jnp.where(lane < valid_c, yc, 0.0)
        var = jnp.sum(yc * yc, axis=-1, keepdims=True) * inv_c
        yn = yc * lax.rsqrt(var + eps)
        o_ref[...] = (yn * g_ref[...] + beta_ref[...]).astype(o_ref.dtype)


def linear_feed_forward(x, w1_t, b1, w2_t, b2, gamma, beta, *,
                        eps=1e-5, tk_target=512):
    """x: (B, T, C); w1_t: (C, 2C); w2_t: (2C, C); biases / LN params 1-D."""
    B, T, C = x.shape
    rows = B * T
    H = 2 * C

    # Pad channel / hidden dims to multiples of 128 -> lane-dense tiles, unmasked stores.
    Cp = _round_up(C, 128)
    Hp = _round_up(H, 128)

    # Hidden-dim chunk: largest multiple of 128 <= tk_target dividing Hp (128 always works).
    tk = 128
    cand = (min(tk_target, Hp) // 128) * 128
    while cand >= 128:
        if Hp % cand == 0:
            tk = cand
            break
        cand -= 128
    num_k = Hp // tk

    # ---- per-chip VMEM budget / regime selection --------------------------------
    vmem_phys, tm_stream = _tpu_vmem_and_stream_tm()
    budget = int(vmem_phys * 0.80)             # leave headroom for compiler scratch

    w_chunk = 2 * Cp * tk * 2                  # one bf16 W1 chunk + one W2 chunk
    b1_chunk = 8 * tk * 4                      # (1, tk) f32, padded to 8 sublanes
    resident_bytes = num_k * (w_chunk + b1_chunk)   # whole weight set, single buffer
    stream_bytes = 2 * (w_chunk + b1_chunk)         # double-buffered chunks
    const_bytes = 3 * 8 * Cp * 4                    # b2 / gamma / beta, single buffer
    per_row = 22 * Cp        # x(2 buf f32) + out(2 buf f32) + acc(f32) + x bf16 scratch

    rows8 = max(8, _round_up(rows, 8))
    tm_probe = min(rows8, 256)
    resident = resident_bytes + const_bytes + per_row * tm_probe <= budget

    fixed = (resident_bytes if resident else stream_bytes) + const_bytes
    tm_target = 512 if resident else tm_stream
    tm_fit = max(8, (budget - fixed) // per_row)
    tm = max(8, (min(tm_target, tm_fit, rows8) // 8) * 8)
    # Give both v7x TensorCores a row tile when the whole batch fits a single tile.
    if resident and rows >= 512 and -(-rows // tm) == 1:
        tm = max(8, _round_up(-(-rows // 2), 8))

    rows_p = _round_up(rows, tm)
    n_row_tiles = rows_p // tm

    # ---- operand prep ------------------------------------------------------------
    x2 = x.reshape(rows, C).astype(jnp.float32)
    x2 = jnp.pad(x2, ((0, rows_p - rows), (0, Cp - C)))

    # bf16 weights for the MXU, zero-padded, laid out as per-chunk contiguous slabs.
    w1_p = jnp.pad(w1_t.astype(jnp.bfloat16), ((0, Cp - C), (0, Hp - H)))
    w2_p = jnp.pad(w2_t.astype(jnp.bfloat16), ((0, Hp - H), (0, Cp - C)))
    w1_p = w1_p.reshape(Cp, num_k, tk).transpose(1, 0, 2)      # (num_k, Cp, tk)
    w2_p = w2_p.reshape(num_k, tk, Cp)                         # (num_k, tk, Cp)
    b1_p = jnp.pad(b1.astype(jnp.float32), (0, Hp - H)).reshape(num_k, 1, tk)
    b2_p = jnp.pad(b2.astype(jnp.float32), (0, Cp - C)).reshape(1, Cp)
    g_p = jnp.pad(gamma.astype(jnp.float32), (0, Cp - C)).reshape(1, Cp)
    beta_p = jnp.pad(beta.astype(jnp.float32), (0, Cp - C)).reshape(1, Cp)

    # ---- specs -------------------------------------------------------------------
    if resident:
        # Constant block index over the whole grid + single buffer -> one HBM fetch.
        w1_spec = pl.BlockSpec((num_k, Cp, tk), lambda i, k: (0, 0, 0),
                               pipeline_mode=pl.Buffered(1))
        b1_spec = pl.BlockSpec((num_k, 1, tk), lambda i, k: (0, 0, 0),
                               pipeline_mode=pl.Buffered(1))
        w2_spec = pl.BlockSpec((num_k, tk, Cp), lambda i, k: (0, 0, 0),
                               pipeline_mode=pl.Buffered(1))
    else:
        # Streamed contiguous chunk slabs, default double-buffering over k.
        w1_spec = pl.BlockSpec((None, Cp, tk), lambda i, k: (k, 0, 0))
        b1_spec = pl.BlockSpec((None, 1, tk), lambda i, k: (k, 0, 0))
        w2_spec = pl.BlockSpec((None, tk, Cp), lambda i, k: (k, 0, 0))

    def const_spec(shape):
        return pl.BlockSpec(shape, lambda i, k: (0, 0), pipeline_mode=pl.Buffered(1))

    vmem_est = fixed + per_row * tm + 2 * tm * tk * 4        # + hidden intermediates
    vmem_limit = int(min(vmem_phys * 0.85,
                         max(32 * 1024 * 1024, int(1.3 * vmem_est))))

    weight_hbm = 2 * Cp * Hp * 2 + Hp * 4
    cost = pl.CostEstimate(
        flops=int(4 * rows_p * Cp * Hp),                 # two (rows, Cp, Hp) matmuls
        transcendentals=int(rows_p * Hp),                # erf over the hidden activations
        bytes_accessed=int(2 * rows_p * Cp * 4                          # x in + out
                           + weight_hbm * (1 if resident else n_row_tiles)
                           + 3 * Cp * 4),                               # b2 / LN params
    )

    out = pl.pallas_call(
        functools.partial(ff_kernel, eps=eps, inv_c=1.0 / C, valid_c=C,
                          resident=resident),
        out_shape=jax.ShapeDtypeStruct((rows_p, Cp), x.dtype),
        grid_spec=pltpu.PrefetchScalarGridSpec(
            num_scalar_prefetch=0,
            grid=(n_row_tiles, num_k),
            in_specs=[
                pl.BlockSpec((tm, Cp), lambda i, k: (i, 0)),   # x row tile (constant over k)
                w1_spec,                                       # W1^T chunks
                b1_spec,                                       # b1 chunks
                w2_spec,                                       # W2^T chunks
                const_spec((1, Cp)),                           # b2
                const_spec((1, Cp)),                           # LN gamma
                const_spec((1, Cp)),                           # LN beta
            ],
            out_specs=pl.BlockSpec((tm, Cp), lambda i, k: (i, 0)),
            scratch_shapes=[pltpu.VMEM((tm, Cp), jnp.float32),     # f32 accumulator
                            pltpu.VMEM((tm, Cp), jnp.bfloat16)],   # bf16 x cache
        ),
        compiler_params=pltpu.CompilerParams(
            dimension_semantics=("parallel", "arbitrary"),
            vmem_limit_bytes=vmem_limit,
        ),
        cost_estimate=cost,
    )(x2, w1_p, b1_p, w2_p, b2_p, g_p, beta_p)

    return out[:rows, :C].reshape(B, T, C)


def spectral_normalize(w):
    # Exact spectral norm; PyTorch's spectral_norm is a one-step power-iteration
    # estimate, so results are equivalent but not bit-identical.
    sigma = jnp.linalg.svd(w, compute_uv=False)[0]
    return w / sigma


def init_params(key, d_hid):
    k1, k2, k3, k4 = jax.random.split(key, 4)
    # nn.Linear stores weight as (out, in); init deterministically.
    w1 = jax.random.normal(k1, (2 * d_hid, d_hid), jnp.float32) * 0.05
    b1 = jax.random.normal(k2, (2 * d_hid,), jnp.float32) * 0.05
    w2 = jax.random.normal(k3, (d_hid, 2 * d_hid), jnp.float32) * 0.05
    b2 = jax.random.normal(k4, (d_hid,), jnp.float32) * 0.05
    w1 = spectral_normalize(w1)
    w2 = spectral_normalize(w2)
    gamma = jnp.ones((d_hid,), jnp.float32)
    beta = jnp.zeros((d_hid,), jnp.float32)
    # kernel computes x @ W^T, so pass transposed weights
    return w1.T, b1, w2.T, b2, gamma, beta


def ff_reference(x, w1_t, b1, w2_t, b2, gamma, beta, eps=1e-5):
    h = jax.nn.gelu(x @ w1_t + b1, approximate=False)
    y = h @ w2_t + b2 + x                       # dropout = identity (eval mode)
    mu = jnp.mean(y, axis=-1, keepdims=True)
    var = jnp.mean((y - mu) ** 2, axis=-1, keepdims=True)
    return (y - mu) * lax.rsqrt(var + eps) * gamma + beta


if __name__ == "__main__":
    B, T, d_hid = 2, 8, 32
    key = jax.random.PRNGKey(0)
    kx, kp = jax.random.split(key)
    x = jax.random.normal(kx, (B, T, d_hid), jnp.float32)
    params = init_params(kp, d_hid)

    out = linear_feed_forward(x, *params)
    jax.block_until_ready(out)

    assert out.shape == (B, T, d_hid) and out.dtype == x.dtype
    assert bool(jnp.all(jnp.isfinite(out)))
    ref = ff_reference(x, *params)
    err = float(jnp.max(jnp.abs(out - ref)))
    assert err < 0.1, f"max abs error vs reference: {err}"   # bf16 MXU operands
    print("KERNEL_OK")
</pallas_src>

<mosaic_0001>
module attributes {stable_mosaic.version = 11 : i64} {
  func.func @ff_kernel(%arg0: i32, %arg1: i32, %arg2: memref<16x128xf32, #tpu.memory_space<vmem>>, %arg3: memref<1x128x128xbf16, #tpu.memory_space<vmem>>, %arg4: memref<1x1x128xf32, #tpu.memory_space<vmem>>, %arg5: memref<1x128x128xbf16, #tpu.memory_space<vmem>>, %arg6: memref<1x128xf32, #tpu.memory_space<vmem>>, %arg7: memref<1x128xf32, #tpu.memory_space<vmem>>, %arg8: memref<1x128xf32, #tpu.memory_space<vmem>>, %arg9: memref<16x128xf32, #tpu.memory_space<vmem>>, %arg10: memref<16x128xf32, #tpu.memory_space<vmem>>, %arg11: memref<16x128xbf16, #tpu.memory_space<vmem>>) attributes {dimension_semantics = [#tpu.dimension_semantics<parallel>, #tpu.dimension_semantics<arbitrary>], iteration_bounds = array<i64: 1, 1>, scalar_prefetch = 0 : i64, scratch_operands = 2 : i64, tpu.core_type = #tpu.core_type<tc>, window_params = [{transform_indices = @transform_0, window_bounds = array<i64: 16, 128>}, {pipeline_mode = #tpu.pipeline_mode<synchronous>, transform_indices = @transform_1, window_bounds = array<i64: 1, 128, 128>}, {pipeline_mode = #tpu.pipeline_mode<synchronous>, transform_indices = @transform_2, window_bounds = array<i64: 1, 1, 128>}, {pipeline_mode = #tpu.pipeline_mode<synchronous>, transform_indices = @transform_3, window_bounds = array<i64: 1, 128, 128>}, {pipeline_mode = #tpu.pipeline_mode<synchronous>, transform_indices = @transform_4, window_bounds = array<i64: 1, 128>}, {pipeline_mode = #tpu.pipeline_mode<synchronous>, transform_indices = @transform_5, window_bounds = array<i64: 1, 128>}, {pipeline_mode = #tpu.pipeline_mode<synchronous>, transform_indices = @transform_6, window_bounds = array<i64: 1, 128>}, {transform_indices = @transform_7, window_bounds = array<i64: 16, 128>}]} {
    %c0_i32 = arith.constant 0 : i32
    %0 = arith.cmpi eq, %arg1, %c0_i32 : i32
    %1 = arith.extui %0 : i1 to i32
    %c0_i32_0 = arith.constant 0 : i32
    %2 = arith.cmpi ne, %1, %c0_i32_0 : i32
    scf.if %2 {
      %c0_18 = arith.constant 0 : index
      %c0_19 = arith.constant 0 : index
      %35 = vector.load %arg2[%c0_18, %c0_19] : memref<16x128xf32, #tpu.memory_space<vmem>>, vector<16x128xf32>
      %36 = arith.truncf %35 : vector<16x128xf32> to vector<16x128xbf16>
      %c0_20 = arith.constant 0 : index
      %c0_21 = arith.constant 0 : index
      %37 = vector.load %arg11[%c0_20, %c0_21] : memref<16x128xbf16, #tpu.memory_space<vmem>>, vector<16x128xbf16>
      tpu.vector_store %arg11[%c0_20, %c0_21], %36 {strides = array<i32>} : memref<16x128xbf16, #tpu.memory_space<vmem>>, vector<16x128xbf16>,
    } else {
    }
    %3 = arith.index_cast %arg1 : i32 to index
    %c0 = arith.constant 0 : index
    %c0_1 = arith.constant 0 : index
    %4 = vector.load %arg3[%3, %c0, %c0_1] : memref<1x128x128xbf16, #tpu.memory_space<vmem>>, vector<1x128x128xbf16>
    %5 = vector.shape_cast %4 : vector<1x128x128xbf16> to vector<128x128xbf16>
    %6 = arith.index_cast %arg1 : i32 to index
    %c0_2 = arith.constant 0 : index
    %c0_3 = arith.constant 0 : index
    %7 = vector.load %arg4[%6, %c0_2, %c0_3] : memref<1x1x128xf32, #tpu.memory_space<vmem>>, vector<1x1x128xf32>
    %8 = vector.shape_cast %7 : vector<1x1x128xf32> to vector<1x128xf32>
    %9 = arith.index_cast %arg1 : i32 to index
    %c0_4 = arith.constant 0 : index
    %c0_5 = arith.constant 0 : index
    %10 = vector.load %arg5[%9, %c0_4, %c0_5] : memref<1x128x128xbf16, #tpu.memory_space<vmem>>, vector<1x128x128xbf16>
    %11 = vector.shape_cast %10 : vector<1x128x128xbf16> to vector<128x128xbf16>
    %c0_6 = arith.constant 0 : index
    %c0_7 = arith.constant 0 : index
    %12 = vector.load %arg11[%c0_6, %c0_7] : memref<16x128xbf16, #tpu.memory_space<vmem>>, vector<16x128xbf16>
    %cst = arith.constant dense<0.000000e+00> : vector<16x128xf32>
    %13 = tpu.matmul %12, %5, %cst {dimension_numbers = #tpu.dot_dimension_numbers<[1], [0], [0], [1], [0, 0, 1, 1], [], []>} : vector<16x128xbf16>, vector<128x128xbf16>, vector<16x128xf32> -> vector<16x128xf32>
    %14 = vector.broadcast %8 : vector<1x128xf32> to vector<16x128xf32>
    %15 = arith.addf %13, %14 : vector<16x128xf32>
    %cst_8 = arith.constant 5.000000e-01 : f32
    %16 = vector.broadcast %cst_8 : f32 to vector<16x128xf32>
    %17 = arith.mulf %16, %15 : vector<16x128xf32>
    %cst_9 = arith.constant 0.707106769 : f32
    %18 = vector.broadcast %cst_9 : f32 to vector<16x128xf32>
    %19 = arith.mulf %15, %18 : vector<16x128xf32>
    %20 = math.erf %19 : vector<16x128xf32>
    %cst_10 = arith.constant 1.000000e+00 : f32
    %21 = vector.broadcast %cst_10 : f32 to vector<16x128xf32>
    %22 = arith.addf %21, %20 : vector<16x128xf32>
    %23 = arith.mulf %17, %22 : vector<16x128xf32>
    %24 = arith.truncf %23 : vector<16x128xf32> to vector<16x128xbf16>
    %cst_11 = arith.constant dense<0.000000e+00> : vector<16x128xf32>
    %25 = tpu.matmul %24, %11, %cst_11 {dimension_numbers = #tpu.dot_dimension_numbers<[1], [0], [0], [1], [0, 0, 1, 1], [], []>} : vector<16x128xbf16>, vector<128x128xbf16>, vector<16x128xf32> -> vector<16x128xf32>
    %c0_i32_12 = arith.constant 0 : i32
    %26 = arith.cmpi eq, %arg1, %c0_i32_12 : i32
    %27 = arith.extui %26 : i1 to i32
    %c0_i32_13 = arith.constant 0 : i32
    %28 = arith.cmpi ne, %27, %c0_i32_13 : i32
    scf.if %28 {
      %c0_18 = arith.constant 0 : index
      %c0_19 = arith.constant 0 : index
      %35 = vector.load %arg2[%c0_18, %c0_19] : memref<16x128xf32, #tpu.memory_space<vmem>>, vector<16x128xf32>
      %c0_20 = arith.constant 0 : index
      %c0_21 = arith.constant 0 : index
      %36 = vector.load %arg6[%c0_20, %c0_21] : memref<1x128xf32, #tpu.memory_space<vmem>>, vector<1x128xf32>
      %37 = vector.broadcast %36 : vector<1x128xf32> to vector<16x128xf32>
      %38 = arith.addf %35, %37 : vector<16x128xf32>
      %39 = arith.addf %38, %25 : vector<16x128xf32>
      %c0_22 = arith.constant 0 : index
      %c0_23 = arith.constant 0 : index
      %40 = vector.load %arg10[%c0_22, %c0_23] : memref<16x128xf32, #tpu.memory_space<vmem>>, vector<16x128xf32>
      tpu.vector_store %arg10[%c0_22, %c0_23], %39 {strides = array<i32>} : memref<16x128xf32, #tpu.memory_space<vmem>>, vector<16x128xf32>,
    } else {
    }
    %c0_i32_14 = arith.constant 0 : i32
    %29 = arith.cmpi sgt, %arg1, %c0_i32_14 : i32
    %30 = arith.extui %29 : i1 to i32
    %c0_i32_15 = arith.constant 0 : i32
    %31 = arith.cmpi ne, %30, %c0_i32_15 : i32
    scf.if %31 {
      %c0_18 = arith.constant 0 : index
      %c0_19 = arith.constant 0 : index
      %35 = vector.load %arg10[%c0_18, %c0_19] : memref<16x128xf32, #tpu.memory_space<vmem>>, vector<16x128xf32>
      %36 = arith.addf %35, %25 : vector<16x128xf32>
      %c0_20 = arith.constant 0 : index
      %c0_21 = arith.constant 0 : index
      %37 = vector.load %arg10[%c0_20, %c0_21] : memref<16x128xf32, #tpu.memory_space<vmem>>, vector<16x128xf32>
      tpu.vector_store %arg10[%c0_20, %c0_21], %36 {strides = array<i32>} : memref<16x128xf32, #tpu.memory_space<vmem>>, vector<16x128xf32>,
    } else {
    }
    %c0_i32_16 = arith.constant 0 : i32
    %32 = arith.cmpi eq, %arg1, %c0_i32_16 : i32
    %33 = arith.extui %32 : i1 to i32
    %c0_i32_17 = arith.constant 0 : i32
    %34 = arith.cmpi ne, %33, %c0_i32_17 : i32
    scf.if %34 {
      %c0_18 = arith.constant 0 : index
      %c0_19 = arith.constant 0 : index
      %35 = vector.load %arg10[%c0_18, %c0_19] : memref<16x128xf32, #tpu.memory_space<vmem>>, vector<16x128xf32>
      %cst_20 = arith.constant dense<0.000000e+00> : vector<16xf32>
      %36 = vector.multi_reduction <add>, %35, %cst_20 [1] : vector<16x128xf32> to vector<16xf32>
      %37 = vector.shape_cast %36 : vector<16xf32> to vector<16x1xf32>
      %cst_21 = arith.constant 3.125000e-02 : f32
      %38 = vector.broadcast %cst_21 : f32 to vector<16x1xf32>
      %39 = arith.mulf %37, %38 : vector<16x1xf32>
      %40 = vector.broadcast %39 : vector<16x1xf32> to vector<16x128xf32>
      %41 = arith.subf %35, %40 : vector<16x128xf32>
      %42 = tpu.iota {dimensions = array<i32: 1>} : vector<16x128xi32>
      %c32_i32 = arith.constant 32 : i32
      %43 = vector.broadcast %c32_i32 : i32 to vector<16x128xi32>
      %44 = arith.cmpi slt, %42, %43 : vector<16x128xi32>
      %cst_22 = arith.constant 0.000000e+00 : f32
      %45 = vector.broadcast %cst_22 : f32 to vector<16x128xf32>
      %46 = arith.select %44, %41, %45 : vector<16x128xi1>, vector<16x128xf32>
      %47 = arith.mulf %46, %46 : vector<16x128xf32>
      %cst_23 = arith.constant dense<0.000000e+00> : vector<16xf32>
      %48 = vector.multi_reduction <add>, %47, %cst_23 [1] : vector<16x128xf32> to vector<16xf32>
      %49 = vector.shape_cast %48 : vector<16xf32> to vector<16x1xf32>
      %cst_24 = arith.constant 3.125000e-02 : f32
      %50 = vector.broadcast %cst_24 : f32 to vector<16x1xf32>
      %51 = arith.mulf %49, %50 : vector<16x1xf32>
      %cst_25 = arith.constant 9.99999974E-6 : f32
      %52 = vector.broadcast %cst_25 : f32 to vector<16x1xf32>
      %53 = arith.addf %51, %52 : vector<16x1xf32>
      %54 = math.rsqrt %53 : vector<16x1xf32>
      %55 = vector.broadcast %54 : vector<16x1xf32> to vector<16x128xf32>
      %56 = arith.mulf %46, %55 : vector<16x128xf32>
      %c0_26 = arith.constant 0 : index
      %c0_27 = arith.constant 0 : index
      %57 = vector.load %arg7[%c0_26, %c0_27] : memref<1x128xf32, #tpu.memory_space<vmem>>, vector<1x128xf32>
      %58 = vector.broadcast %57 : vector<1x128xf32> to vector<16x128xf32>
      %59 = arith.mulf %56, %58 : vector<16x128xf32>
      %c0_28 = arith.constant 0 : index
      %c0_29 = arith.constant 0 : index
      %60 = vector.load %arg8[%c0_28, %c0_29] : memref<1x128xf32, #tpu.memory_space<vmem>>, vector<1x128xf32>
      %61 = vector.broadcast %60 : vector<1x128xf32> to vector<16x128xf32>
      %62 = arith.addf %59, %61 : vector<16x128xf32>
      %c0_30 = arith.constant 0 : index
      %c0_31 = arith.constant 0 : index
      %63 = vector.load %arg9[%c0_30, %c0_31] : memref<16x128xf32, #tpu.memory_space<vmem>>, vector<16x128xf32>
      tpu.vector_store %arg9[%c0_30, %c0_31], %62 {strides = array<i32>} : memref<16x128xf32, #tpu.memory_space<vmem>>, vector<16x128xf32>,
    } else {
    }
    return
  }
  func.func @transform_0(%arg0: i32, %arg1: i32) -> (i32, i32) {
    %c0_i32 = arith.constant 0 : i32
    %c0_i32_0 = arith.constant 0 : i32
    return %arg0, %c0_i32 : i32, i32
  }
  func.func @transform_1(%arg0: i32, %arg1: i32) -> (i32, i32, i32) {
    %c0_i32 = arith.constant 0 : i32
    %c0_i32_0 = arith.constant 0 : i32
    %c0_i32_1 = arith.constant 0 : i32
    %c0_i32_2 = arith.constant 0 : i32
    return %c0_i32, %c0_i32_0, %c0_i32_1 : i32, i32, i32
  }
  func.func @transform_2(%arg0: i32, %arg1: i32) -> (i32, i32, i32) {
    %c0_i32 = arith.constant 0 : i32
    %c0_i32_0 = arith.constant 0 : i32
    %c0_i32_1 = arith.constant 0 : i32
    %c0_i32_2 = arith.constant 0 : i32
    return %c0_i32, %c0_i32_0, %c0_i32_1 : i32, i32, i32
  }
  func.func @transform_3(%arg0: i32, %arg1: i32) -> (i32, i32, i32) {
    %c0_i32 = arith.constant 0 : i32
    %c0_i32_0 = arith.constant 0 : i32
    %c0_i32_1 = arith.constant 0 : i32
    %c0_i32_2 = arith.constant 0 : i32
    return %c0_i32, %c0_i32_0, %c0_i32_1 : i32, i32, i32
  }
  func.func @transform_4(%arg0: i32, %arg1: i32) -> (i32, i32) {
    %c0_i32 = arith.constant 0 : i32
    %c0_i32_0 = arith.constant 0 : i32
    %c0_i32_1 = arith.constant 0 : i32
    return %c0_i32, %c0_i32_0 : i32, i32
  }
  func.func @transform_5(%arg0: i32, %arg1: i32) -> (i32, i32) {
    %c0_i32 = arith.constant 0 : i32
    %c0_i32_0 = arith.constant 0 : i32
    %c0_i32_1 = arith.constant 0 : i32
    return %c0_i32, %c0_i32_0 : i32, i32
  }
  func.func @transform_6(%arg0: i32, %arg1: i32) -> (i32, i32) {
    %c0_i32 = arith.constant 0 : i32
    %c0_i32_0 = arith.constant 0 : i32
    %c0_i32_1 = arith.constant 0 : i32
    return %c0_i32, %c0_i32_0 : i32, i32
  }
  func.func @transform_7(%arg0: i32, %arg1: i32) -> (i32, i32) {
    %c0_i32 = arith.constant 0 : i32
    %c0_i32_0 = arith.constant 0 : i32
    return %arg0, %c0_i32 : i32, i32
  }
}

</mosaic_0001>

<bundles_post_ra>
// kernel: tpu_custom_call.1
= control target key start
LH: loop header
LB: loop body
LE: loop exit
PB: predicated region body
PF: predicated region fallthrough
CT: control target
= control target key end

     0   :  { %12 = vsyncpa [#allocation5], 0  ;;  %s737_s0 = inlined_call_operand.hbm [shape: f32[16,128], index: 0, kind: input, shape index: {}]   ;;  %s738_s1 = inlined_call_operand.hbm [shape: bf16[1,128,128], index: 1, kind: input, shape index: {}]   ;;  %s739_s2 = inlined_call_operand.vmem [shape: f32[1,1,128], index: 2, kind: input, shape index: {}]   ;;  %s740_s3 = inlined_call_operand.hbm [shape: bf16[1,128,128], index: 3, kind: input, shape index: {}]   ;;  %s741_s4 = inlined_call_operand.vmem [shape: f32[1,128], index: 4, kind: input, shape index: {}]   ;;  %s742_s5 = inlined_call_operand.vmem [shape: f32[1,128], index: 5, kind: input, shape index: {}]   ;;  %s743_s6 = inlined_call_operand.vmem [shape: f32[1,128], index: 6, kind: input, shape index: {}]   ;;  %s744_s7 = inlined_call_operand.hbm [shape: f32[16,128], index: 7, kind: output, shape index: {}]  }
   0x1   :  { %13 = vsyncpa [#allocation8], 0 }
   0x2   :  { %14 = vsyncpa [#allocation6], 0  ;;  %s615_s24 = smov [#allocation7]   ;;  %s521_s28 = scalar_lea.hbm %s738_s1, 1024 }
   0x3   :  { %s32_s25 = sshll.u32 %s615_s24, 4  ;;  %p522_p0 = scmp.ne.s32.totalorder %s738_s1, %s521_s28  ;;  %s33_s25 = int_to_ptr.vmem [resolvable:$true] %s32_s25 }
   0x4   :  { %p525_p1 = scmp.lt.u32.totalorder %s521_s28, %s738_s1 }
   0x6   :  { %p527_p2 = pnand %p525_p1, %p522_p0 }
   0x8   :  { %530 = shalt.err (!%p527_p2)
}
   0x9   :  { %s531_s10 = scalar_lea.vmem %s33_s25, 1024  ;;  %p536_p4 = scmp.lt.s32.totalorder %s33_s25, %s33_s25 }
   0xa   :  { %p532_p3 = scmp.ne.s32.totalorder %s33_s25, %s531_s10  ;;  %p537_p5 = scmp.lt.s32.totalorder %s531_s10, %s531_s10 }
   0xc   :  { %p538_p6 = por %p537_p5, %p536_p4 }
   0xe   :  { %p539_p7 = pnand %p538_p6, %p532_p3 }
  0x10   :  { %542 = shalt.err (!%p539_p7)
}
  0x11   :  { %s616_s11 = smov 64   ;;  %s617_s12 = smov 4  }
  0x12   :  { %38 = dma.hbm_to_vmem [thread:$0]  %s738_s1, 1024, %s33_s25, [#allocation8], %s616_s11, %s616_s11, %s617_s12  }
  0x13   :  { %s618_s15 = smov [#allocation4]   ;;  %s543_s19 = scalar_lea.hbm %s737_s0, 256 }
  0x14   :  { %s20_s16 = sshll.u32 %s618_s15, 4  ;;  %p544_p8 = scmp.ne.s32.totalorder %s737_s0, %s543_s19  ;;  %s21_s16 = int_to_ptr.vmem [resolvable:$true] %s20_s16 }
  0x15   :  { %p547_p9 = scmp.lt.u32.totalorder %s543_s19, %s737_s0 }
  0x17   :  { %p549_p10 = pnand %p547_p9, %p544_p8 }
  0x19   :  { %552 = shalt.err (!%p549_p10)
}
  0x1a   :  { %s553_s24 = scalar_lea.vmem %s21_s16, 256  ;;  %p558_p12 = scmp.lt.s32.totalorder %s21_s16, %s21_s16 }
  0x1b   :  { %p554_p11 = scmp.ne.s32.totalorder %s21_s16, %s553_s24  ;;  %p559_p13 = scmp.lt.s32.totalorder %s553_s24, %s553_s24 }
  0x1d   :  { %p560_p0 = por %p559_p13, %p558_p12 }
  0x1f   :  { %p561_p1 = pnand %p560_p0, %p554_p11 }
  0x21   :  { %564 = shalt.err (!%p561_p1)
}
  0x22   :  { %s619_s1 = smov 128   ;;  %s620_s25 = smov 8  }
  0x23   :  { %26 = dma.hbm_to_vmem [thread:$0]  %s737_s0, 256, %s21_s16, [#allocation5], %s619_s1, %s619_s1, %s620_s25  }
  0x24   :  { %s621_s28 = smov [#allocation9]   ;;  %s565_s9 = scalar_lea.hbm %s740_s3, 1024 }
  0x25   :  { %s46_s29 = sshll.u32 %s621_s28, 4  ;;  %p566_p2 = scmp.ne.s32.totalorder %s740_s3, %s565_s9  ;;  %s47_s29 = int_to_ptr.vmem [resolvable:$true] %s46_s29 }
  0x26   :  { %p569_p3 = scmp.lt.u32.totalorder %s565_s9, %s740_s3 }
  0x28   :  { %p571_p4 = pnand %p569_p3, %p566_p2 }
  0x2a   :  { %574 = shalt.err (!%p571_p4)
}
  0x2b   :  { %s575_s17 = scalar_lea.vmem %s47_s29, 1024  ;;  %p580_p6 = scmp.lt.s32.totalorder %s47_s29, %s47_s29 }
  0x2c   :  { %p576_p5 = scmp.ne.s32.totalorder %s47_s29, %s575_s17  ;;  %p581_p7 = scmp.lt.s32.totalorder %s575_s17, %s575_s17 }
  0x2e   :  { %p582_p8 = por %p581_p7, %p580_p6 }
  0x30   :  { %p583_p9 = pnand %p582_p8, %p576_p5 }
  0x32   :  { %586 = shalt.err (!%p583_p9)
}
  0x33   :  { %52 = dma.hbm_to_vmem [thread:$0]  %s740_s3, 1024, %s47_s29, [#allocation8], %s616_s11, %s616_s11, %s617_s12  }
  0x34   :  { %609 = dma.done.wait [#allocation5], 256  }
  0x35   :  { %610 = vsyncadd [#allocation5], 4294967040 }
  0x36   :  { %611 = dma.done.wait [#allocation8], 2048  }
  0x37   :  { %612 = vsyncadd [#allocation8], 4294965248  ;;  %v622_v0 = vmov 0.0   ;;  %vm623_vm0 = vmmov 0   ;;  %v497_v1 = vld [vmem:[#allocation7] sm:$0xff]   ;;  %v498_v2 = vld [vmem:[#allocation7 + $0x8] sm:$0xff]   ;;  %v352_v47 = vlaneseq }
  0x38   :  { %447 = vmatprep.subr.bf16.mxu0 %v622_v0  ;;  %463 = vmatprep.mubr.msk.bf16.mxu0 %vm623_vm0, %v622_v0  ;;  %v499_v3 = vld [vmem:[#allocation7 + $0x10] sm:$0xff]   ;;  %v505_v4 = vld [vmem:[#allocation9] sm:$0xff]   ;;  %v500_v5 = vld [vmem:[#allocation7 + $0x18] sm:$0xff]   ;;  %s624_s21 = smov [#allocation10]  }
  0x39   :  { %467 = vmatprep.subr.bf16.mxu1 %v622_v0  ;;  %483 = vmatprep.mubr.msk.bf16.mxu1 %vm623_vm0, %v622_v0  ;;  %v506_v6 = vld [vmem:[#allocation9 + $0x8] sm:$0xff]   ;;  %v501_v7 = vld [vmem:[#allocation7 + $0x20] sm:$0xff]   ;;  %v503_v9 = vld [vmem:[#allocation7 + $0x30] sm:$0xff]   ;;  %v353_v48 = vand.u32 127, %v352_v47  ;;  %s396_s22 = sshll.u32 %s624_s21, 4  ;;  %s397_s22 = int_to_ptr.vmem [resolvable:$true] %s396_s22 }
  0x3a   :  { %448 = vmatpush3.bf16.msra.mxu0 %v497_v1  ;;  %468 = vmatpush3.bf16.msra.mxu1 %v505_v4  ;;  %v502_v8 = vld [vmem:[#allocation7 + $0x28] sm:$0xff]   ;;  %v504_v10 = vld [vmem:[#allocation7 + $0x38] sm:$0xff]   ;;  %v73_v11 = vld [vmem:[#allocation4] sm:$0xff]  ;;  %s587_s23 = scalar_lea.vmem %s397_s22, 256  ;;  %p592_p11 = scmp.lt.s32.totalorder %s397_s22, %s397_s22 }
  0x3b   :  { %449 = vmatprep.subr.bf16.mxu0 %v622_v0  ;;  %469 = vmatprep.subr.bf16.mxu1 %v622_v0  ;;  %v74_v12 = vld [vmem:[#allocation4 + $0x8] sm:$0xff]  ;;  %v507_v14 = vld [vmem:[#allocation9 + $0x10] sm:$0xff]   ;;  %v509_v16 = vld [vmem:[#allocation9 + $0x20] sm:$0xff]   ;;  %vm354_vm1 = vcmp.lt.s32.totalorder %v353_v48, 32  ;;  %p588_p10 = scmp.ne.s32.totalorder %s397_s22, %s587_s23  ;;  %p593_p12 = scmp.lt.s32.totalorder %s587_s23, %s587_s23 }
  0x3c   :  { %v75_v13 = vpack.c.bf16 %v74_v12, %v73_v11  ;;  %v508_v15 = vld [vmem:[#allocation9 + $0x18] sm:$0xff]   ;;  %v510_v17 = vld [vmem:[#allocation9 + $0x28] sm:$0xff]   ;;  %v511_v18 = vld [vmem:[#allocation9 + $0x30] sm:$0xff]  }
  0x3d   :  { %v512_v19 = vld [vmem:[#allocation9 + $0x38] sm:$0xff]   ;;  %v409_v20 = vld [vmem:[%s739_s2] ss:$0 sm:$0xff]  ;;  %p594_p13 = por %p593_p12, %p592_p11 }
  0x3e   :  { %450 = vmatpush3.bf16.msra.mxu0 %v498_v2  ;;  %470 = vmatpush3.bf16.msra.mxu1 %v506_v6  ;;  %v426_v38 = vld [vmem:[%s741_s4] ss:$0 sm:$0xff] }
  0x3f   :  { %451 = vmatprep.subr.bf16.mxu0 %v622_v0  ;;  %471 = vmatprep.subr.bf16.mxu1 %v622_v0  ;;  %v323_v39 = vadd.f32 %v426_v38, %v73_v11  ;;  %v324_v43 = vadd.f32 %v426_v38, %v74_v12  ;;  %v427_v2 = vld [vmem:[%s742_s5] ss:$0 sm:$0xff]  ;;  %p595_p0 = pnand %p594_p13, %p588_p10 }
  0x40   :  { %v428_v4 = vld [vmem:[%s743_s6] ss:$0 sm:$0xff] }
  0x42   :  { %452 = vmatpush3.bf16.msra.mxu0 %v499_v3  ;;  %472 = vmatpush3.bf16.msra.mxu1 %v507_v14 }
  0x43   :  { %453 = vmatprep.subr.bf16.mxu0 %v622_v0  ;;  %473 = vmatprep.subr.bf16.mxu1 %v622_v0 }
  0x46   :  { %454 = vmatpush3.bf16.msra.mxu0 %v500_v5  ;;  %474 = vmatpush3.bf16.msra.mxu1 %v508_v15 }
  0x47   :  { %455 = vmatprep.subr.bf16.mxu0 %v622_v0  ;;  %475 = vmatprep.subr.bf16.mxu1 %v622_v0 }
  0x4a   :  { %456 = vmatpush3.bf16.msra.mxu0 %v501_v7  ;;  %476 = vmatpush3.bf16.msra.mxu1 %v509_v16 }
  0x4b   :  { %457 = vmatprep.subr.bf16.mxu0 %v622_v0  ;;  %477 = vmatprep.subr.bf16.mxu1 %v622_v0 }
  0x4e   :  { %458 = vmatpush3.bf16.msra.mxu0 %v502_v8  ;;  %478 = vmatpush3.bf16.msra.mxu1 %v510_v17 }
  0x4f   :  { %459 = vmatprep.subr.bf16.mxu0 %v622_v0  ;;  %479 = vmatprep.subr.bf16.mxu1 %v622_v0 }
  0x52   :  { %460 = vmatpush3.bf16.msra.mxu0 %v503_v9  ;;  %480 = vmatpush3.bf16.msra.mxu1 %v511_v18 }
  0x53   :  { %461 = vmatprep.subr.bf16.mxu0 %v622_v0  ;;  %481 = vmatprep.subr.bf16.mxu1 %v622_v0 }
  0x56   :  { %462 = vmatpush3.bf16.msra.mxu0 %v504_v10  ;;  %482 = vmatpush3.bf16.msra.mxu1 %v512_v19 }
  0x59   :  { %464 = vmatmul.mubr.bf16.vlgmr.msra.gmra.mrb[0].mxu0 %v75_v13 }
 0x12c   :  { %v204_v21 = vpop.f32.mrb[0].mxu0 }
 0x12d   :  { %v205_v22 = vadd.f32 %v409_v20, %v204_v21  ;;  %v465_v23 = vpop.f32.mrb[1].mxu0 }
 0x12e   :  { %v207_v24 = vpop.f32.mrb[2].mxu0 }
 0x12f   :  { %v213_v25 = vmul.f32 0.70710677, %v205_v22  ;;  %v208_v26 = vadd.f32 %v409_v20, %v207_v24  ;;  %v466_v27 = vpop.f32.mrb[3].mxu0  ;;  %v211_v32 = vmul.f32 0.5, %v205_v22 }
 0x131   :  { %513 = verf.f32 %v213_v25  ;;  %v214_v28 = vmul.f32 0.70710677, %v208_v26  ;;  %v212_v33 = vmul.f32 0.5, %v208_v26 }
 0x133   :  { %515 = verf.f32 %v214_v28 }
 0x13b   :  { %v514_v29 = vpop.eup %513 }
 0x13c   :  { %v217_v30 = vadd.f32 1.0, %v514_v29 }
 0x13d   :  { %v516_v31 = vpop.eup %515 }
 0x13e   :  { %v218_v34 = vadd.f32 1.0, %v516_v31  ;;  %v219_v35 = vmul.f32 %v217_v30, %v211_v32 }
 0x140   :  { %v220_v36 = vmul.f32 %v218_v34, %v212_v33 }
 0x142   :  { %v221_v37 = vpack.c.bf16 %v220_v36, %v219_v35 }
 0x144   :  { %484 = vmatmul.mubr.bf16.vlgmr.msra.gmra.mrb[0].mxu1 %v221_v37 }
 0x217   :  { %v304_v40 = vpop.f32.mrb[0].mxu1 }
 0x218   :  { %v325_v41 = vadd.f32 %v323_v39, %v304_v40  ;;  %v485_v42 = vpop.f32.mrb[1].mxu1 }
 0x219   :  { %v307_v44 = vpop.f32.mrb[2].mxu1 }
 0x21a   :  { %344 = vadd.xlane.f32.xlu0 %v325_v41  ;;  %v486_v45 = vpop.f32.mrb[3].mxu1  ;;  %v326_v46 = vadd.f32 %v324_v43, %v307_v44 }
 0x21e   :  { %346 = vadd.xlane.f32.xlu0 %v326_v46 }
 0x2a7   :  { %v345_v49 = vpop.xlane.xlu0 %344 }
 0x2a8   :  { %v348_v50 = vmul.f32 0.03125, %v345_v49 }
 0x2aa   :  { %v350_v51 = vsub.f32 %v325_v41, %v348_v50 }
 0x2ab   :  { %v347_v52 = vpop.xlane.xlu0 %346 }
 0x2ac   :  { %v349_v53 = vmul.f32 0.03125, %v347_v52  ;;  %v355_v54 = vsel %vm354_vm1, %v350_v51, 0.0 }
 0x2ad   :  { %v357_v55 = vmul.f32 %v355_v54, %v355_v54 }
 0x2ae   :  { %v351_v56 = vsub.f32 %v326_v46, %v349_v53 }
 0x2af   :  { %359 = vadd.xlane.f32.xlu1 %v357_v55 }
 0x2b0   :  { %v356_v57 = vsel %vm354_vm1, %v351_v56, 0.0 }
 0x2b1   :  { %v358_v58 = vmul.f32 %v356_v57, %v356_v57 }
 0x2b3   :  { %361 = vadd.xlane.f32.xlu1 %v358_v58 }
 0x33c   :  { %v360_v59 = vpop.xlane.xlu1 %359 }
 0x33d   :  { %v363_v60 = vmul.f32 0.03125, %v360_v59 }
 0x33f   :  { %v365_v61 = vadd.f32 1e-05, %v363_v60 }
 0x340   :  { %v362_v62 = vpop.xlane.xlu1 %361 }
 0x341   :  { %517 = vrsqrt.f32 %v365_v61  ;;  %v364_v63 = vmul.f32 0.03125, %v362_v62 }
 0x343   :  { %v366_v0 = vadd.f32 1e-05, %v364_v63 }
 0x345   :  { %519 = vrsqrt.f32 %v366_v0 }
 0x34b   :  { %v518_v1 = vpop.eup %517 }
 0x34c   :  { %v369_v3 = vmul.f32 %v518_v1, %v355_v54 }
 0x34e   :  { %v378_v5 = vmul.f32 %v427_v2, %v369_v3 }
 0x34f   :  { %v520_v6 = vpop.eup %519 }
 0x350   :  { %v370_v7 = vmul.f32 %v520_v6, %v356_v57  ;;  %v387_v8 = vadd.f32 %v428_v4, %v378_v5 }
 0x352   :  { %v379_v9 = vmul.f32 %v427_v2, %v370_v7  ;;  %389 = vst [vmem:[#allocation10] sm:$0xff] %v387_v8 }
 0x354   :  { %v388_v10 = vadd.f32 %v428_v4, %v379_v9 }
 0x356   :  { %390 = vst [vmem:[#allocation10 + $0x8] sm:$0xff] %v388_v10 }
 0x357   :  { %598 = shalt.err (!%p595_p0)
}
 0x358   :  { %s599_s24 = scalar_lea.hbm %s744_s7, 256 }
 0x359   :  { %p600_p1 = scmp.ne.s32.totalorder %s744_s7, %s599_s24  ;;  %p603_p2 = scmp.lt.u32.totalorder %s599_s24, %s744_s7 }
 0x35b   :  { %p605_p3 = pnand %p603_p2, %p600_p1 }
 0x35d   :  { %608 = shalt.err (!%p605_p3)
}
 0x35e   :  { %402 = dma.vmem_to_hbm [thread:$0]  %s397_s22, 256, %s744_s7, [#allocation6], %s619_s1, %s619_s1, %s620_s25  }
 0x35f   :  { %613 = dma.done.wait [#allocation6], 256  }
 0x360   :  { %614 = vsyncadd [#allocation6], 4294967040 }
 0x361   :  { %406 = vsyncpa [#allocation5], 1 }
 0x362   :  { %407 = vsyncpa [#allocation8], 1 }
 0x363   :  { %408 = vsyncpa [#allocation6], 1 }

</bundles_post_ra>
